<compile_context>
chip_gen: v6e
topology: v6e:2x2x1
jax: 0.10.0
libtpu: 0.0.40
codegen_flags: <defaults>
</compile_context>

<pallas_src>
import functools

import jax
import jax.numpy as jnp
from jax.experimental import pallas as pl
from jax.experimental.pallas import tpu as pltpu


def _round_up(x, m):
    return ((x + m - 1) // m) * m


def _choose_tk(K, *, max_tk=2048, full_k_threshold=4096):
    """Pick a K tile that avoids padding the contracted axis whenever possible."""
    if K <= full_k_threshold:
        return K, K                      # single K step: K fully resident
    for cand in range(max_tk, 0, -128):  # largest multiple-of-128 divisor of K
        if K % cand == 0:
            return cand, K
    return max_tk, _round_up(K, max_tk)  # ragged K: fall back to zero-padding


def _make_linear_kernel(n_k_steps, compute_dtype):
    """One (i, j[, k]) tile of y = x @ w + b, with w already in (K, O) layout."""

    def _mm(x_ref, w_ref):
        # Per-tile cast to the MXU compute dtype (hidden under the DMA); f32
        # accumulation on the MXU.
        xb = x_ref[...].astype(compute_dtype)
        wb = w_ref[...].astype(compute_dtype)
        return jnp.dot(xb, wb, preferred_element_type=jnp.float32)

    if n_k_steps == 1:
        # K is untiled: no accumulator read-modify-write, no pl.when.
        def kernel(x_ref, w_ref, b_ref, o_ref):
            o_ref[...] = jnp.broadcast_to(b_ref[...], o_ref.shape) + _mm(x_ref, w_ref)

        return kernel

    def kernel(x_ref, w_ref, b_ref, o_ref):
        k = pl.program_id(2)

        @pl.when(k == 0)
        def _init():
            # Fold the bias into the accumulator init.
            o_ref[...] = jnp.broadcast_to(b_ref[...], o_ref.shape)

        o_ref[...] += _mm(x_ref, w_ref)

    return kernel


def single_layer_mlp(
    x,
    weight,
    bias,
    *,
    tm=256,
    tn=256,
    compute_dtype=jnp.bfloat16,
):
    """Forward pass of SingleLayerMLP.

    x:      (B, ...)  float32 — flattened to (B, K) like torch's .view(B, -1)
    weight: (O, K)    float32  (nn.Linear convention)
    bias:   (O,)      float32
    returns (B, O)    x.dtype

    Set compute_dtype=jnp.float32 for bit-closer-to-torch results (slower MXU).
    """
    B = x.shape[0]
    K = 1
    for d in x.shape[1:]:
        K *= d
    O = weight.shape[0]
    assert weight.shape[1] == K, "weight must be (output_size, input_size)"

    x_flat = x.reshape(B, K)  # torch's .view(B, -1), row-major

    # ---- tile plan ---------------------------------------------------------
    # M: never below the 8-sublane granule; pad B up to tm.
    tm = max(_round_up(min(tm, B), 8), 8)
    Bp = _round_up(B, tm)
    # N: lane-dense output — pad O to a multiple of 128; tn divides Op.
    Op = _round_up(O, 128)
    tn = min(_round_up(tn, 128), Op)
    if Op % tn != 0:
        tn = 128  # Op is always a multiple of 128
    # K: prefer full-K / a divisor of K so the contracted axis is never padded.
    tk, Kp = _choose_tk(K)
    n_k = Kp // tk

    # ---- operand prep (minimal wrapper passes) -----------------------------
    xp = x_flat
    if Bp != B or Kp != K:
        xp = jnp.pad(xp, ((0, Bp - B), (0, Kp - K)))

    # One-time transpose to (K, O): canonical MXU RHS orientation (K on the
    # sublane axis, O on lanes).  Combined with the O->Op pad in one copy.
    wt = weight.T
    if Kp != K or Op != O:
        wt = jnp.pad(wt, ((0, Kp - K), (0, Op - O)))

    b2d = bias.astype(jnp.float32).reshape(1, O)
    if Op != O:
        b2d = jnp.pad(b2d, ((0, 0), (0, Op - O)))

    grid = (Bp // tm, Op // tn, n_k)

    cost = pl.CostEstimate(
        flops=2 * B * K * O,
        transcendentals=0,
        bytes_accessed=(
            x_flat.size * x_flat.dtype.itemsize
            + weight.size * weight.dtype.itemsize
            + bias.size * 4
            + B * O * 4
        ),
    )

    out = pl.pallas_call(
        _make_linear_kernel(n_k, compute_dtype),
        out_shape=jax.ShapeDtypeStruct((Bp, Op), jnp.float32),
        grid_spec=pltpu.PrefetchScalarGridSpec(
            num_scalar_prefetch=0,
            grid=grid,
            in_specs=[
                # x tile: (tm, tk) — rows i, K-slab k
                pl.BlockSpec((tm, tk), lambda i, j, k: (i, k)),
                # weight tile: (tk, tn) in (K, O) layout — K on sublanes,
                # output features lane-dense; no in-kernel transpose.
                pl.BlockSpec((tk, tn), lambda i, j, k: (k, j)),
                # bias tile: (1, tn)
                pl.BlockSpec((1, tn), lambda i, j, k: (0, j)),
            ],
            # Same output block for every k -> VMEM-resident f32 accumulator.
            out_specs=pl.BlockSpec((tm, tn), lambda i, j, k: (i, j)),
        ),
        compiler_params=pltpu.CompilerParams(
            dimension_semantics=("parallel", "parallel", "arbitrary"),
            vmem_limit_bytes=32 * 1024 * 1024,
        ),
        cost_estimate=cost,
    )(xp, wt, b2d)

    if (Bp, Op) != (B, O):
        out = out[:B, :O]
    return out.astype(x.dtype)


if __name__ == "__main__":
    # Small shapes consistent with the module: B=2, C=4, H=W=16 -> K=1024, O=16.
    B, C, H, W = 2, 4, 16, 16
    K = C * H * W
    O = 16

    key = jax.random.PRNGKey(0)
    kx, kw, kb = jax.random.split(key, 3)

    x = jax.random.normal(kx, (B, C, H, W), dtype=jnp.float32)
    # Deterministic synthetic parameters (same shapes as nn.Linear(K, O)).
    bound = 1.0 / (K ** 0.5)
    weight = jax.random.uniform(kw, (O, K), jnp.float32, -bound, bound)
    bias = jax.random.uniform(kb, (O,), jnp.float32, -bound, bound)

    fwd = jax.jit(functools.partial(single_layer_mlp, tm=256, tn=256))
    out = fwd(x, weight, bias)
    out = jax.block_until_ready(out)

    # Reference in plain JAX (full f32); tolerance sized for bf16 MXU operands.
    ref = x.reshape(B, -1) @ weight.T + bias
    assert out.shape == (B, O)
    assert jnp.allclose(out, ref, atol=3e-2, rtol=3e-2), (
        f"max abs err = {jnp.max(jnp.abs(out - ref))}"
    )

    print("KERNEL_OK")
</pallas_src>

<mosaic_0001>
module attributes {stable_mosaic.version = 11 : i64} {
  func.func @kernel(%arg0: i32, %arg1: i32, %arg2: i32, %arg3: memref<8x1024xf32, #tpu.memory_space<vmem>>, %arg4: memref<1024x128xf32, #tpu.memory_space<vmem>>, %arg5: memref<1x128xf32, #tpu.memory_space<vmem>>, %arg6: memref<8x128xf32, #tpu.memory_space<vmem>>) attributes {dimension_semantics = [#tpu.dimension_semantics<parallel>, #tpu.dimension_semantics<parallel>, #tpu.dimension_semantics<arbitrary>], iteration_bounds = array<i64: 1, 1, 1>, scalar_prefetch = 0 : i64, scratch_operands = 0 : i64, tpu.core_type = #tpu.core_type<tc>, window_params = [{transform_indices = @transform_0, window_bounds = array<i64: 8, 1024>}, {transform_indices = @transform_1, window_bounds = array<i64: 1024, 128>}, {transform_indices = @transform_2, window_bounds = array<i64: 1, 128>}, {transform_indices = @transform_3, window_bounds = array<i64: 8, 128>}]} {
    %c0 = arith.constant 0 : index
    %c0_0 = arith.constant 0 : index
    %0 = vector.load %arg5[%c0, %c0_0] : memref<1x128xf32, #tpu.memory_space<vmem>>, vector<1x128xf32>
    %1 = vector.shape_cast %0 : vector<1x128xf32> to vector<1x128xf32>
    %2 = vector.broadcast %1 : vector<1x128xf32> to vector<8x128xf32>
    %c0_1 = arith.constant 0 : index
    %c0_2 = arith.constant 0 : index
    %3 = vector.load %arg3[%c0_1, %c0_2] : memref<8x1024xf32, #tpu.memory_space<vmem>>, vector<8x1024xf32>
    %4 = arith.truncf %3 : vector<8x1024xf32> to vector<8x1024xbf16>
    %c0_3 = arith.constant 0 : index
    %c0_4 = arith.constant 0 : index
    %5 = vector.load %arg4[%c0_3, %c0_4] : memref<1024x128xf32, #tpu.memory_space<vmem>>, vector<1024x128xf32>
    %6 = arith.truncf %5 : vector<1024x128xf32> to vector<1024x128xbf16>
    %cst = arith.constant dense<0.000000e+00> : vector<8x128xf32>
    %7 = tpu.matmul %4, %6, %cst {dimension_numbers = #tpu.dot_dimension_numbers<[1], [0], [0], [1], [0, 0, 1, 1], [], []>} : vector<8x1024xbf16>, vector<1024x128xbf16>, vector<8x128xf32> -> vector<8x128xf32>
    %8 = arith.addf %2, %7 : vector<8x128xf32>
    %c0_5 = arith.constant 0 : index
    %c0_6 = arith.constant 0 : index
    %9 = vector.load %arg6[%c0_5, %c0_6] : memref<8x128xf32, #tpu.memory_space<vmem>>, vector<8x128xf32>
    tpu.vector_store %arg6[%c0_5, %c0_6], %8 {strides = array<i32>} : memref<8x128xf32, #tpu.memory_space<vmem>>, vector<8x128xf32>,
    return
  }
  func.func @transform_0(%arg0: i32, %arg1: i32, %arg2: i32) -> (i32, i32) {
    %c0_i32 = arith.constant 0 : i32
    return %arg0, %arg2 : i32, i32
  }
  func.func @transform_1(%arg0: i32, %arg1: i32, %arg2: i32) -> (i32, i32) {
    %c0_i32 = arith.constant 0 : i32
    return %arg2, %arg1 : i32, i32
  }
  func.func @transform_2(%arg0: i32, %arg1: i32, %arg2: i32) -> (i32, i32) {
    %c0_i32 = arith.constant 0 : i32
    %c0_i32_0 = arith.constant 0 : i32
    return %c0_i32, %arg1 : i32, i32
  }
  func.func @transform_3(%arg0: i32, %arg1: i32, %arg2: i32) -> (i32, i32) {
    %c0_i32 = arith.constant 0 : i32
    return %arg0, %arg1 : i32, i32
  }
}

</mosaic_0001>

<bundles_post_ra>
// kernel: single_layer_mlp.1
= control target key start
LH: loop header
LB: loop body
LE: loop exit
PB: predicated region body
PF: predicated region fallthrough
CT: control target
= control target key end

     0   :  { %s919_s1 = inlined_call_operand.vmem [shape: f32[1024,128], index: 1, kind: input, shape index: {}]   ;;  %s920_s0 = inlined_call_operand.vmem [shape: f32[8,1024], index: 0, kind: input, shape index: {}]   ;;  %s921_s2 = inlined_call_operand.vmem [shape: f32[1,128], index: 2, kind: input, shape index: {}]   ;;  %s922_s3 = inlined_call_operand.vmem [shape: f32[8,128], index: 3, kind: output, shape index: {}]  }
   0x1   :  { %v68_v0 = vld [vmem:[%s919_s1 + $0xf0] sm:$0xff]  ;;  %v69_v1 = vld [vmem:[%s919_s1 + $0xf8] sm:$0xff]  ;;  %v66_v11 = vld [vmem:[%s919_s1 + $0xe0] sm:$0xff] }
   0x2   :  { %v100_v2 = vld [vmem:[%s919_s1 + $0x1f0] sm:$0xff]  ;;  %v181_v3 = vpack.c.bf16 %v69_v1, %v68_v0  ;;  %v101_v4 = vld [vmem:[%s919_s1 + $0x1f8] sm:$0xff]  ;;  %v67_v13 = vld [vmem:[%s919_s1 + $0xe8] sm:$0xff] }
   0x3   :  { %v52_v5 = vld [vmem:[%s919_s1 + $0x70] sm:$0xff]  ;;  %v53_v6 = vld [vmem:[%s919_s1 + $0x78] sm:$0xff]  ;;  %v197_v7 = vpack.c.bf16 %v101_v4, %v100_v2  ;;  %v98_v14 = vld [vmem:[%s919_s1 + $0x1e0] sm:$0xff]  ;;  %v180_v16 = vpack.c.bf16 %v67_v13, %v66_v11 }
   0x4   :  { %v173_v8 = vpack.c.bf16 %v53_v6, %v52_v5  ;;  %v84_v9 = vld [vmem:[%s919_s1 + $0x170] sm:$0xff]  ;;  %v85_v10 = vld [vmem:[%s919_s1 + $0x178] sm:$0xff]  ;;  %397 = vmatprep.subr.bf16.mxu0 %v181_v3  ;;  %v99_v15 = vld [vmem:[%s919_s1 + $0x1e8] sm:$0xff] }
   0x5   :  { %v189_v12 = vpack.c.bf16 %v85_v10, %v84_v9  ;;  %419 = vmatprep.subr.bf16.mxu1 %v197_v7  ;;  %v196_v17 = vpack.c.bf16 %v99_v15, %v98_v14  ;;  %v50_v18 = vld [vmem:[%s919_s1 + $0x60] sm:$0xff]  ;;  %v51_v19 = vld [vmem:[%s919_s1 + $0x68] sm:$0xff]  ;;  %v64_v23 = vld [vmem:[%s919_s1 + $0xd0] sm:$0xff] }
   0x6   :  { %398 = vmatpush3.bf16.msra.mxu0 %v173_v8  ;;  %v82_v20 = vld [vmem:[%s919_s1 + $0x160] sm:$0xff]  ;;  %v172_v21 = vpack.c.bf16 %v51_v19, %v50_v18  ;;  %v83_v22 = vld [vmem:[%s919_s1 + $0x168] sm:$0xff]  ;;  %v65_v24 = vld [vmem:[%s919_s1 + $0xd8] sm:$0xff] }
   0x7   :  { %420 = vmatpush3.bf16.msra.mxu1 %v189_v12  ;;  %399 = vmatprep.subr.bf16.mxu0 %v180_v16  ;;  %v188_v25 = vpack.c.bf16 %v83_v22, %v82_v20  ;;  %v179_v26 = vpack.c.bf16 %v65_v24, %v64_v23  ;;  %v96_v27 = vld [vmem:[%s919_s1 + $0x1d0] sm:$0xff]  ;;  %v97_v28 = vld [vmem:[%s919_s1 + $0x1d8] sm:$0xff]  ;;  %v62_v35 = vld [vmem:[%s919_s1 + $0xc0] sm:$0xff] }
   0x8   :  { %421 = vmatprep.subr.bf16.mxu1 %v196_v17  ;;  %v48_v29 = vld [vmem:[%s919_s1 + $0x50] sm:$0xff]  ;;  %v195_v30 = vpack.c.bf16 %v97_v28, %v96_v27  ;;  %v49_v31 = vld [vmem:[%s919_s1 + $0x58] sm:$0xff]  ;;  %v63_v36 = vld [vmem:[%s919_s1 + $0xc8] sm:$0xff] }
   0x9   :  { %v80_v32 = vld [vmem:[%s919_s1 + $0x150] sm:$0xff]  ;;  %v81_v33 = vld [vmem:[%s919_s1 + $0x158] sm:$0xff]  ;;  %v171_v34 = vpack.c.bf16 %v49_v31, %v48_v29  ;;  %v94_v37 = vld [vmem:[%s919_s1 + $0x1c0] sm:$0xff]  ;;  %v178_v39 = vpack.c.bf16 %v63_v36, %v62_v35 }
   0xa   :  { %400 = vmatpush3.bf16.msra.mxu0 %v172_v21  ;;  %v187_v38 = vpack.c.bf16 %v81_v33, %v80_v32  ;;  %v95_v40 = vld [vmem:[%s919_s1 + $0x1c8] sm:$0xff]  ;;  %v46_v41 = vld [vmem:[%s919_s1 + $0x40] sm:$0xff]  ;;  %v60_v46 = vld [vmem:[%s919_s1 + $0xb0] sm:$0xff] }
   0xb   :  { %422 = vmatpush3.bf16.msra.mxu1 %v188_v25  ;;  %401 = vmatprep.subr.bf16.mxu0 %v179_v26  ;;  %v47_v42 = vld [vmem:[%s919_s1 + $0x48] sm:$0xff]  ;;  %v194_v43 = vpack.c.bf16 %v95_v40, %v94_v37  ;;  %v78_v44 = vld [vmem:[%s919_s1 + $0x140] sm:$0xff]  ;;  %v61_v47 = vld [vmem:[%s919_s1 + $0xb8] sm:$0xff] }
   0xc   :  { %423 = vmatprep.subr.bf16.mxu1 %v195_v30  ;;  %v79_v45 = vld [vmem:[%s919_s1 + $0x148] sm:$0xff]  ;;  %v92_v48 = vld [vmem:[%s919_s1 + $0x1b0] sm:$0xff]  ;;  %v93_v49 = vld [vmem:[%s919_s1 + $0x1b8] sm:$0xff]  ;;  %v170_v50 = vpack.c.bf16 %v47_v42, %v46_v41  ;;  %v177_v52 = vpack.c.bf16 %v61_v47, %v60_v46 }
   0xd   :  { %v186_v51 = vpack.c.bf16 %v79_v45, %v78_v44  ;;  %v44_v53 = vld [vmem:[%s919_s1 + $0x30] sm:$0xff]  ;;  %v45_v54 = vld [vmem:[%s919_s1 + $0x38] sm:$0xff]  ;;  %v193_v56 = vpack.c.bf16 %v93_v49, %v92_v48  ;;  %v58_v58 = vld [vmem:[%s919_s1 + $0xa0] sm:$0xff] }
   0xe   :  { %402 = vmatpush3.bf16.msra.mxu0 %v171_v34  ;;  %v76_v55 = vld [vmem:[%s919_s1 + $0x130] sm:$0xff]  ;;  %v77_v57 = vld [vmem:[%s919_s1 + $0x138] sm:$0xff]  ;;  %v59_v59 = vld [vmem:[%s919_s1 + $0xa8] sm:$0xff]  ;;  %v169_v62 = vpack.c.bf16 %v45_v54, %v44_v53 }
   0xf   :  { %424 = vmatpush3.bf16.msra.mxu1 %v187_v38  ;;  %403 = vmatprep.subr.bf16.mxu0 %v178_v39  ;;  %v90_v60 = vld [vmem:[%s919_s1 + $0x1a0] sm:$0xff]  ;;  %v91_v61 = vld [vmem:[%s919_s1 + $0x1a8] sm:$0xff]  ;;  %v185_v63 = vpack.c.bf16 %v77_v57, %v76_v55  ;;  %v176_v0 = vpack.c.bf16 %v59_v59, %v58_v58  ;;  %v56_v6 = vld [vmem:[%s919_s1 + $0x90] sm:$0xff] }
  0x10   :  { %425 = vmatprep.subr.bf16.mxu1 %v194_v43  ;;  %v42_v1 = vld [vmem:[%s919_s1 + $0x20] sm:$0xff]  ;;  %v43_v2 = vld [vmem:[%s919_s1 + $0x28] sm:$0xff]  ;;  %v192_v4 = vpack.c.bf16 %v91_v61, %v90_v60  ;;  %v57_v7 = vld [vmem:[%s919_s1 + $0x98] sm:$0xff] }
  0x11   :  { %v74_v3 = vld [vmem:[%s919_s1 + $0x120] sm:$0xff]  ;;  %v75_v5 = vld [vmem:[%s919_s1 + $0x128] sm:$0xff]  ;;  %v88_v8 = vld [vmem:[%s919_s1 + $0x190] sm:$0xff]  ;;  %v168_v10 = vpack.c.bf16 %v43_v2, %v42_v1  ;;  %v175_v14 = vpack.c.bf16 %v57_v7, %v56_v6 }
  0x12   :  { %404 = vmatpush3.bf16.msra.mxu0 %v170_v50  ;;  %v89_v9 = vld [vmem:[%s919_s1 + $0x198] sm:$0xff]  ;;  %v40_v11 = vld [vmem:[%s919_s1 + $0x10] sm:$0xff]  ;;  %v184_v13 = vpack.c.bf16 %v75_v5, %v74_v3  ;;  %v23_v16 = vld [vmem:[%s920_s0 + $0x8] sm:$0xff] }
  0x13   :  { %426 = vmatpush3.bf16.msra.mxu1 %v186_v51  ;;  %405 = vmatprep.subr.bf16.mxu0 %v177_v52  ;;  %v41_v12 = vld [vmem:[%s919_s1 + $0x18] sm:$0xff]  ;;  %v72_v15 = vld [vmem:[%s919_s1 + $0x110] sm:$0xff]  ;;  %v191_v18 = vpack.c.bf16 %v89_v9, %v88_v8  ;;  %v54_v20 = vld [vmem:[%s919_s1 + $0x80] sm:$0xff]  ;;  %v31_v22 = vpack.c.bf16 %v23_v16, %v23_v16 }
  0x14   :  { %427 = vmatprep.subr.bf16.mxu1 %v193_v56  ;;  %v25_v17 = vld [vmem:[%s920_s0 + $0x18] sm:$0xff]  ;;  %v55_v21 = vld [vmem:[%s919_s1 + $0x88] sm:$0xff]  ;;  %v86_v24 = vld [vmem:[%s919_s1 + $0x180] sm:$0xff]  ;;  %v167_v26 = vpack.c.bf16 %v41_v12, %v40_v11 }
  0x15   :  { %v73_v19 = vld [vmem:[%s919_s1 + $0x118] sm:$0xff]  ;;  %v33_v23 = vpack.c.bf16 %v25_v17, %v25_v17  ;;  %v87_v25 = vld [vmem:[%s919_s1 + $0x188] sm:$0xff]  ;;  %262 = vmatprep.mubr.bf16.mxu0 %v31_v22  ;;  %v174_v28 = vpack.c.bf16 %v55_v21, %v54_v20  ;;  %v38_v29 = vld [vmem:[%s919_s1] sm:$0xff] }
  0x16   :  { %406 = vmatpush3.bf16.msra.mxu0 %v169_v62  ;;  %v183_v27 = vpack.c.bf16 %v73_v19, %v72_v15  ;;  %v39_v30 = vld [vmem:[%s919_s1 + $0x8] sm:$0xff]  ;;  %v70_v31 = vld [vmem:[%s919_s1 + $0x100] sm:$0xff]  ;;  %v190_v32 = vpack.c.bf16 %v87_v25, %v86_v24  ;;  %v132_v34 = vld [vmem:[%s919_s1 + $0x2f0] sm:$0xff] }
  0x17   :  { %428 = vmatpush3.bf16.msra.mxu1 %v185_v63  ;;  %407 = vmatprep.subr.bf16.mxu0 %v176_v0  ;;  %v71_v33 = vld [vmem:[%s919_s1 + $0x108] sm:$0xff]  ;;  %v133_v35 = vld [vmem:[%s919_s1 + $0x2f8] sm:$0xff]  ;;  %v164_v36 = vld [vmem:[%s919_s1 + $0x3f0] sm:$0xff]  ;;  %v166_v38 = vpack.c.bf16 %v39_v30, %v38_v29 }
  0x18   :  { %429 = vmatprep.subr.bf16.mxu1 %v192_v4  ;;  %302 = vmatprep.mubr.bf16.mxu1 %v33_v23  ;;  %v165_v37 = vld [vmem:[%s919_s1 + $0x3f8] sm:$0xff]  ;;  %v22_v39 = vld [vmem:[%s920_s0] sm:$0xff]  ;;  %v24_v40 = vld [vmem:[%s920_s0 + $0x10] sm:$0xff]  ;;  %v182_v41 = vpack.c.bf16 %v71_v33, %v70_v31  ;;  %v213_v42 = vpack.c.bf16 %v133_v35, %v132_v34 }
  0x19   :  { %v116_v43 = vld [vmem:[%s919_s1 + $0x270] sm:$0xff]  ;;  %v117_v44 = vld [vmem:[%s919_s1 + $0x278] sm:$0xff]  ;;  %v229_v46 = vpack.c.bf16 %v165_v37, %v164_v36  ;;  %v130_v48 = vld [vmem:[%s919_s1 + $0x2e0] sm:$0xff]  ;;  %v30_v50 = vpack.c.bf16 %v22_v39, %v22_v39  ;;  %v32_v53 = vpack.c.bf16 %v24_v40, %v24_v40 }
  0x1a   :  { %408 = vmatpush3.bf16.msra.mxu0 %v168_v10  ;;  %v148_v45 = vld [vmem:[%s919_s1 + $0x370] sm:$0xff]  ;;  %v149_v47 = vld [vmem:[%s919_s1 + $0x378] sm:$0xff]  ;;  %v131_v49 = vld [vmem:[%s919_s1 + $0x2e8] sm:$0xff]  ;;  %v205_v54 = vpack.c.bf16 %v117_v44, %v116_v43 }
  0x1b   :  { %430 = vmatpush3.bf16.msra.mxu1 %v184_v13  ;;  %409 = vmatprep.subr.bf16.mxu0 %v175_v14  ;;  %v162_v51 = vld [vmem:[%s919_s1 + $0x3e0] sm:$0xff]  ;;  %v163_v52 = vld [vmem:[%s919_s1 + $0x3e8] sm:$0xff]  ;;  %v221_v55 = vpack.c.bf16 %v149_v47, %v148_v45  ;;  %v212_v56 = vpack.c.bf16 %v131_v49, %v130_v48  ;;  %v128_v62 = vld [vmem:[%s919_s1 + $0x2d0] sm:$0xff] }
  0x1c   :  { %431 = vmatprep.subr.bf16.mxu1 %v191_v18  ;;  %v114_v57 = vld [vmem:[%s919_s1 + $0x260] sm:$0xff]  ;;  %v115_v58 = vld [vmem:[%s919_s1 + $0x268] sm:$0xff]  ;;  %v228_v60 = vpack.c.bf16 %v163_v52, %v162_v51  ;;  %v129_v63 = vld [vmem:[%s919_s1 + $0x2d8] sm:$0xff] }
  0x1d   :  { %v146_v59 = vld [vmem:[%s919_s1 + $0x360] sm:$0xff]  ;;  %v147_v61 = vld [vmem:[%s919_s1 + $0x368] sm:$0xff]  ;;  %v160_v0 = vld [vmem:[%s919_s1 + $0x3d0] sm:$0xff]  ;;  %v204_v2 = vpack.c.bf16 %v115_v58, %v114_v57  ;;  %v211_v4 = vpack.c.bf16 %v129_v63, %v128_v62 }
  0x1e   :  { %410 = vmatpush3.bf16.msra.mxu0 %v167_v26  ;;  %v161_v1 = vld [vmem:[%s919_s1 + $0x3d8] sm:$0xff]  ;;  %v220_v3 = vpack.c.bf16 %v147_v61, %v146_v59  ;;  %v112_v5 = vld [vmem:[%s919_s1 + $0x250] sm:$0xff]  ;;  %v126_v10 = vld [vmem:[%s919_s1 + $0x2c0] sm:$0xff] }
  0x1f   :  { %432 = vmatpush3.bf16.msra.mxu1 %v183_v27  ;;  %411 = vmatprep.subr.bf16.mxu0 %v174_v28  ;;  %v113_v6 = vld [vmem:[%s919_s1 + $0x258] sm:$0xff]  ;;  %v144_v7 = vld [vmem:[%s919_s1 + $0x350] sm:$0xff]  ;;  %v227_v8 = vpack.c.bf16 %v161_v1, %v160_v0  ;;  %v127_v11 = vld [vmem:[%s919_s1 + $0x2c8] sm:$0xff] }
  0x20   :  { %433 = vmatprep.subr.bf16.mxu1 %v190_v32  ;;  %v145_v9 = vld [vmem:[%s919_s1 + $0x358] sm:$0xff]  ;;  %v158_v12 = vld [vmem:[%s919_s1 + $0x3c0] sm:$0xff]  ;;  %v159_v13 = vld [vmem:[%s919_s1 + $0x3c8] sm:$0xff]  ;;  %v203_v14 = vpack.c.bf16 %v113_v6, %v112_v5  ;;  %v210_v17 = vpack.c.bf16 %v127_v11, %v126_v10 }
  0x21   :  { %v110_v15 = vld [vmem:[%s919_s1 + $0x240] sm:$0xff]  ;;  %v219_v16 = vpack.c.bf16 %v145_v9, %v144_v7  ;;  %v111_v18 = vld [vmem:[%s919_s1 + $0x248] sm:$0xff]  ;;  %v226_v21 = vpack.c.bf16 %v159_v13, %v158_v12  ;;  %v124_v22 = vld [vmem:[%s919_s1 + $0x2b0] sm:$0xff] }
  0x22   :  { %412 = vmatpush3.bf16.msra.mxu0 %v166_v38  ;;  %v142_v19 = vld [vmem:[%s919_s1 + $0x340] sm:$0xff]  ;;  %v143_v20 = vld [vmem:[%s919_s1 + $0x348] sm:$0xff]  ;;  %v125_v23 = vld [vmem:[%s919_s1 + $0x2b8] sm:$0xff]  ;;  %v202_v26 = vpack.c.bf16 %v111_v18, %v110_v15 }
  0x23   :  { %434 = vmatpush3.bf16.msra.mxu1 %v182_v41  ;;  %441 = vmatprep.subr.bf16.mxu0 %v213_v42  ;;  %v156_v24 = vld [vmem:[%s919_s1 + $0x3b0] sm:$0xff]  ;;  %v157_v25 = vld [vmem:[%s919_s1 + $0x3b8] sm:$0xff]  ;;  %v218_v27 = vpack.c.bf16 %v143_v20, %v142_v19  ;;  %v27_v28 = vld [vmem:[%s920_s0 + $0x28] sm:$0xff]  ;;  %v209_v30 = vpack.c.bf16 %v125_v23, %v124_v22 }
  0x24   :  { %463 = vmatprep.subr.bf16.mxu1 %v229_v46  ;;  %v29_v29 = vld [vmem:[%s920_s0 + $0x38] sm:$0xff]  ;;  %v108_v31 = vld [vmem:[%s919_s1 + $0x230] sm:$0xff]  ;;  %v35_v34 = vpack.c.bf16 %v27_v28, %v27_v28  ;;  %v225_v36 = vpack.c.bf16 %v157_v25, %v156_v24  ;;  %v122_v38 = vld [vmem:[%s919_s1 + $0x2a0] sm:$0xff] }
  0x25   :  { %263 = vmatmul.mubr.bf16.vlgmr.msra.gmra.mxu0 %v30_v50  ;;  %v109_v32 = vld [vmem:[%s919_s1 + $0x238] sm:$0xff]  ;;  %v140_v33 = vld [vmem:[%s919_s1 + $0x330] sm:$0xff]  ;;  %v37_v35 = vpack.c.bf16 %v29_v29, %v29_v29  ;;  %v123_v39 = vld [vmem:[%s919_s1 + $0x2a8] sm:$0xff] }
  0x26   :  { %303 = vmatmul.mubr.bf16.vlgmr.msra.gmra.mxu1 %v32_v53  ;;  %442 = vmatpush3.bf16.msra.mxu0 %v205_v54  ;;  %v141_v37 = vld [vmem:[%s919_s1 + $0x338] sm:$0xff]  ;;  %v154_v40 = vld [vmem:[%s919_s1 + $0x3a0] sm:$0xff]  ;;  %v155_v41 = vld [vmem:[%s919_s1 + $0x3a8] sm:$0xff]  ;;  %v201_v42 = vpack.c.bf16 %v109_v32, %v108_v31  ;;  %v208_v44 = vpack.c.bf16 %v123_v39, %v122_v38 }
  0x27   :  { %464 = vmatpush3.bf16.msra.mxu1 %v221_v55  ;;  %443 = vmatprep.subr.bf16.mxu0 %v212_v56  ;;  %v217_v43 = vpack.c.bf16 %v141_v37, %v140_v33  ;;  %v106_v45 = vld [vmem:[%s919_s1 + $0x220] sm:$0xff]  ;;  %v107_v46 = vld [vmem:[%s919_s1 + $0x228] sm:$0xff]  ;;  %v224_v48 = vpack.c.bf16 %v155_v41, %v154_v40  ;;  %v120_v50 = vld [vmem:[%s919_s1 + $0x290] sm:$0xff] }
  0x28   :  { %465 = vmatprep.subr.bf16.mxu1 %v228_v60  ;;  %342 = vmatprep.mubr.bf16.mxu0 %v35_v34  ;;  %v138_v47 = vld [vmem:[%s919_s1 + $0x320] sm:$0xff]  ;;  %v139_v49 = vld [vmem:[%s919_s1 + $0x328] sm:$0xff]  ;;  %v121_v51 = vld [vmem:[%s919_s1 + $0x298] sm:$0xff]  ;;  %v200_v54 = vpack.c.bf16 %v107_v46, %v106_v45 }
  0x29   :  { %382 = vmatprep.mubr.bf16.mxu1 %v37_v35  ;;  %v152_v52 = vld [vmem:[%s919_s1 + $0x390] sm:$0xff]  ;;  %v153_v53 = vld [vmem:[%s919_s1 + $0x398] sm:$0xff]  ;;  %v216_v55 = vpack.c.bf16 %v139_v49, %v138_v47  ;;  %v207_v56 = vpack.c.bf16 %v121_v51, %v120_v50  ;;  %v118_v62 = vld [vmem:[%s919_s1 + $0x280] sm:$0xff] }
  0x2a   :  { %444 = vmatpush3.bf16.msra.mxu0 %v204_v2  ;;  %v104_v57 = vld [vmem:[%s919_s1 + $0x210] sm:$0xff]  ;;  %v105_v58 = vld [vmem:[%s919_s1 + $0x218] sm:$0xff]  ;;  %v223_v60 = vpack.c.bf16 %v153_v53, %v152_v52  ;;  %v119_v63 = vld [vmem:[%s919_s1 + $0x288] sm:$0xff] }
  0x2b   :  { %466 = vmatpush3.bf16.msra.mxu1 %v220_v3  ;;  %445 = vmatprep.subr.bf16.mxu0 %v211_v4  ;;  %v136_v59 = vld [vmem:[%s919_s1 + $0x310] sm:$0xff]  ;;  %v137_v61 = vld [vmem:[%s919_s1 + $0x318] sm:$0xff]  ;;  %v150_v0 = vld [vmem:[%s919_s1 + $0x380] sm:$0xff]  ;;  %v199_v2 = vpack.c.bf16 %v105_v58, %v104_v57  ;;  %v206_v4 = vpack.c.bf16 %v119_v63, %v118_v62 }
  0x2c   :  { %467 = vmatprep.subr.bf16.mxu1 %v227_v8  ;;  %v151_v1 = vld [vmem:[%s919_s1 + $0x388] sm:$0xff]  ;;  %v215_v3 = vpack.c.bf16 %v137_v61, %v136_v59  ;;  %v102_v5 = vld [vmem:[%s919_s1 + $0x200] sm:$0xff]  ;;  %v28_v13 = vld [vmem:[%s920_s0 + $0x30] sm:$0xff] }
  0x2d   :  { %v103_v6 = vld [vmem:[%s919_s1 + $0x208] sm:$0xff]  ;;  %v222_v7 = vpack.c.bf16 %v151_v1, %v150_v0  ;;  %v134_v8 = vld [vmem:[%s919_s1 + $0x300] sm:$0xff]  ;;  %v36_v15 = vpack.c.bf16 %v28_v13, %v28_v13 }
  0x2e   :  { %446 = vmatpush3.bf16.msra.mxu0 %v203_v14  ;;  %v135_v9 = vld [vmem:[%s919_s1 + $0x308] sm:$0xff]  ;;  %v198_v10 = vpack.c.bf16 %v103_v6, %v102_v5  ;;  %v26_v11 = vld [vmem:[%s920_s0 + $0x20] sm:$0xff] }
  0x2f   :  { %468 = vmatpush3.bf16.msra.mxu1 %v219_v16  ;;  %447 = vmatprep.subr.bf16.mxu0 %v210_v17  ;;  %v214_v12 = vpack.c.bf16 %v135_v9, %v134_v8  ;;  %v34_v14 = vpack.c.bf16 %v26_v11, %v26_v11 }
  0x30   :  { %469 = vmatprep.subr.bf16.mxu1 %v226_v21 }
  0x32   :  { %448 = vmatpush3.bf16.msra.mxu0 %v202_v26 }
  0x33   :  { %470 = vmatpush3.bf16.msra.mxu1 %v218_v27  ;;  %449 = vmatprep.subr.bf16.mxu0 %v209_v30 }
  0x34   :  { %471 = vmatprep.subr.bf16.mxu1 %v225_v36  ;;  %v396_v36 = vld [vmem:[%s921_s2] ss:$0 sm:$0xff] }
  0x36   :  { %450 = vmatpush3.bf16.msra.mxu0 %v201_v42 }
  0x37   :  { %472 = vmatpush3.bf16.msra.mxu1 %v217_v43  ;;  %451 = vmatprep.subr.bf16.mxu0 %v208_v44 }
  0x38   :  { %473 = vmatprep.subr.bf16.mxu1 %v224_v48 }
  0x3a   :  { %452 = vmatpush3.bf16.msra.mxu0 %v200_v54 }
  0x3b   :  { %474 = vmatpush3.bf16.msra.mxu1 %v216_v55  ;;  %453 = vmatprep.subr.bf16.mxu0 %v207_v56 }
  0x3c   :  { %475 = vmatprep.subr.bf16.mxu1 %v223_v60 }
  0x3e   :  { %454 = vmatpush3.bf16.msra.mxu0 %v199_v2 }
  0x3f   :  { %476 = vmatpush3.bf16.msra.mxu1 %v215_v3  ;;  %455 = vmatprep.subr.bf16.mxu0 %v206_v4 }
  0x40   :  { %477 = vmatprep.subr.bf16.mxu1 %v222_v7 }
  0x42   :  { %456 = vmatpush3.bf16.msra.mxu0 %v198_v10 }
  0x43   :  { %478 = vmatpush3.bf16.msra.mxu1 %v214_v12 }
  0x45   :  { %343 = vmatmul.mubr.bf16.vlgmr.msra.gmra.mxu0 %v34_v14 }
  0x46   :  { %383 = vmatmul.mubr.bf16.vlgmr.msra.gmra.mxu1 %v36_v15 }
  0xe5   :  { %v413_v16 = vpop.f32.mrf.mxu0 }
  0xe6   :  { %v435_v17 = vpop.f32.mrf.mxu1 }
  0xe7   :  { %v414_v18 = vpop.f32.mrf.mxu0 }
  0xe8   :  { %v436_v19 = vpop.f32.mrf.mxu1  ;;  %v415_v24 = vadd.f32 %v414_v18, %v413_v16 }
  0xe9   :  { %v416_v20 = vpop.f32.mrf.mxu0  ;;  %v437_v25 = vadd.f32 %v436_v19, %v435_v17 }
  0xea   :  { %v438_v21 = vpop.f32.mrf.mxu1 }
  0xeb   :  { %v417_v22 = vpop.f32.mrf.mxu0  ;;  %v305_v29 = vadd.f32 %v437_v25, %v415_v24 }
  0xec   :  { %v439_v23 = vpop.f32.mrf.mxu1 }
 0x105   :  { %v457_v26 = vpop.f32.mrf.mxu0 }
 0x106   :  { %v479_v27 = vpop.f32.mrf.mxu1 }
 0x107   :  { %v458_v28 = vpop.f32.mrf.mxu0 }
 0x108   :  { %v459_v30 = vadd.f32 %v458_v28, %v457_v26  ;;  %v480_v31 = vpop.f32.mrf.mxu1 }
 0x109   :  { %v460_v32 = vpop.f32.mrf.mxu0  ;;  %v481_v34 = vadd.f32 %v480_v31, %v479_v27 }
 0x10a   :  { %v345_v33 = vadd.f32 %v459_v30, %v305_v29  ;;  %v482_v35 = vpop.f32.mrf.mxu1 }
 0x10b   :  { %v461_v37 = vpop.f32.mrf.mxu0 }
 0x10c   :  { %v385_v38 = vadd.f32 %v481_v34, %v345_v33  ;;  %v483_v39 = vpop.f32.mrf.mxu1 }
 0x10e   :  { %v390_v40 = vadd.f32 %v396_v36, %v385_v38 }
 0x110   :  { %391 = vst [vmem:[%s922_s3] sm:$0xff] %v390_v40 }

</bundles_post_ra>
